<compile_context>
chip_gen: v5e
topology: v5e:2x2
jax: 0.10.0
libtpu: 0.0.40
codegen_flags: <defaults>
</compile_context>

<pallas_src>
import math
from functools import partial

import jax
import jax.numpy as jnp
from jax.experimental import pallas as pl
from jax.experimental.pallas import tpu as pltpu

_INV_SQRT_2 = 1.0 / math.sqrt(2.0)
_BN_EPS = 1e-5


def _erf(z):
    # Abramowitz & Stegun 7.1.26 rational approximation, |err| < 1.5e-7.
    # (Keeps exact-GELU semantics to ~1e-7 using only exp / mul / add / where;
    #  exp goes to the EUP slot, so the extra polynomial is cheap filler.)
    a1, a2, a3, a4, a5 = (0.254829592, -0.284496736, 1.421413741,
                          -1.453152027, 1.061405429)
    p = 0.3275911
    az = jnp.abs(z)
    t = 1.0 / (1.0 + p * az)
    poly = ((((a5 * t + a4) * t + a3) * t + a2) * t + a1) * t
    y = 1.0 - poly * jnp.exp(-az * az)
    return jnp.where(z >= 0, y, -y)


def fused_attribute_kernel(x_ref, w0_ref, b0_ref, w1_ref, b1_ref,
                           emb_ref, logp_ref, *, num_heads, cmax):
    x = x_ref[...]                                                  # (TB, in_dim)

    # BN-folded Linear for ALL heads at once: (TB, H*P), already in the
    # torch.cat(dim=1) layout -> written straight to the embedding output.
    emb = jnp.dot(x, w0_ref[...], preferred_element_type=jnp.float32) + b0_ref[...]
    emb_ref[...] = emb

    # exact (erf) GELU
    act = 0.5 * emb * (1.0 + _erf(emb * _INV_SQRT_2))

    # Block-diagonal second Linear for ALL heads: (TB, H*Cmax).
    # Padded class columns have zero weights and bias -1e30.
    logit = jnp.dot(act, w1_ref[...], preferred_element_type=jnp.float32) + b1_ref[...]

    # Segmented log-softmax, one segment of width Cmax per head (static
    # unroll, H is small); each segment stored directly into the output ref.
    for h in range(num_heads):
        seg = logit[:, h * cmax:(h + 1) * cmax]
        m = jnp.max(seg, axis=-1, keepdims=True)
        z = seg - m
        lse = jnp.log(jnp.sum(jnp.exp(z), axis=-1, keepdims=True))
        logp_ref[:, h * cmax:(h + 1) * cmax] = z - lse


def fuse_params(params, class_counts):
    """One-time parameter prep: fold eval-mode BN into Linear0 and pack heads.

    Returns dense matrices so the kernel is a single fused call:
      w0_all : (in_dim, H*P)   BN-folded, head-concatenated first Linear
      b0_all : (1, H*P)
      w1_blk : (H*P, H*Cmax)   block-diagonal second Linear (zero off-blocks)
      b1_all : (1, H*Cmax)     padded classes carry -1e30
    """
    w0, b0 = params["w0"], params["b0"]
    gamma, beta = params["gamma"], params["beta"]
    mean, var = params["running_mean"], params["running_var"]
    w1, b1 = params["w1"], params["b1"]

    H, in_dim, P = w0.shape
    Cmax = w1.shape[2]

    scale = gamma * jax.lax.rsqrt(var + _BN_EPS)             # (H, 1, P)
    w0_f = w0 * scale                                        # (H, in_dim, P)
    b0_f = (b0 - mean) * scale + beta                        # (H, 1, P)

    w0_all = jnp.transpose(w0_f, (1, 0, 2)).reshape(in_dim, H * P)
    b0_all = jnp.transpose(b0_f, (1, 0, 2)).reshape(1, H * P)

    w1_blk = jnp.zeros((H * P, H * Cmax), jnp.float32)
    for h in range(H):
        w1_blk = w1_blk.at[h * P:(h + 1) * P, h * Cmax:(h + 1) * Cmax].set(w1[h])
    b1_all = jnp.transpose(b1, (1, 0, 2)).reshape(1, H * Cmax)

    return dict(w0_all=w0_all, b0_all=b0_all, w1_blk=w1_blk, b1_all=b1_all,
                num_heads=H, projected_dim=P, cmax=Cmax)


def attribute_classifier5_forward(x, fused, class_counts, *, batch_tile=128):
    B, in_dim = x.shape
    H, P, Cmax = fused["num_heads"], fused["projected_dim"], fused["cmax"]

    # Batch tiling: one block when B is small, 128-row tiles otherwise
    # (Pallas masks the partial last block).
    tb = B if B <= batch_tile else batch_tile
    grid = (pl.cdiv(B, tb),)

    # Weights/biases: whole array, constant block index -> resident in VMEM,
    # no re-fetch across grid steps.
    w0_spec = pl.BlockSpec((in_dim, H * P), lambda i: (0, 0))
    b0_spec = pl.BlockSpec((1, H * P), lambda i: (0, 0))
    w1_spec = pl.BlockSpec((H * P, H * Cmax), lambda i: (0, 0))
    b1_spec = pl.BlockSpec((1, H * Cmax), lambda i: (0, 0))

    emb, logp = pl.pallas_call(
        partial(fused_attribute_kernel, num_heads=H, cmax=Cmax),
        out_shape=(
            jax.ShapeDtypeStruct((B, H * P), jnp.float32),      # concat embedding
            jax.ShapeDtypeStruct((B, H * Cmax), jnp.float32),   # concat log-probs
        ),
        grid=grid,
        in_specs=[
            pl.BlockSpec((tb, in_dim), lambda i: (i, 0)),
            w0_spec, b0_spec, w1_spec, b1_spec,
        ],
        out_specs=(
            pl.BlockSpec((tb, H * P), lambda i: (i, 0)),
            pl.BlockSpec((tb, H * Cmax), lambda i: (i, 0)),
        ),
        compiler_params=pltpu.CompilerParams(
            dimension_semantics=("parallel",)),
    )(x, fused["w0_all"], fused["b0_all"], fused["w1_blk"], fused["b1_all"])

    # eval-branch output: concatenated attribute embedding (already dim=1 order)
    # train-branch output: list of per-attribute log-softmax tensors
    probability = [logp[:, h * Cmax: h * Cmax + c]
                   for h, c in enumerate(class_counts)]
    return emb, probability


def init_params(key, dict_attribute, in_dim, projected_dim):
    """Deterministic synthetic init mirroring the module's __init__ shapes.

    Linear weights ~ trunc_normal(std=0.02) (≈ normal*0.02 here), biases = 0.
    BatchNorm1d: weight=1, bias=0, running_mean=0, running_var=1 (defaults).
    """
    H = len(dict_attribute)
    class_counts = [len(v) + 1 for v in dict_attribute.values()]
    Cmax = max(class_counts)
    keys = jax.random.split(key, 2 * H)

    w0 = jnp.stack([
        jax.random.normal(keys[2 * i], (in_dim, projected_dim), jnp.float32) * 0.02
        for i in range(H)
    ])
    b0 = jnp.zeros((H, 1, projected_dim), jnp.float32)

    gamma = jnp.ones((H, 1, projected_dim), jnp.float32)
    beta = jnp.zeros((H, 1, projected_dim), jnp.float32)
    running_mean = jnp.zeros((H, 1, projected_dim), jnp.float32)
    running_var = jnp.ones((H, 1, projected_dim), jnp.float32)

    w1 = jnp.zeros((H, projected_dim, Cmax), jnp.float32)
    b1 = jnp.full((H, 1, Cmax), -1e30, jnp.float32)   # padded classes -> -inf logits
    for i, c in enumerate(class_counts):
        wi = jax.random.normal(keys[2 * i + 1], (projected_dim, c), jnp.float32) * 0.02
        w1 = w1.at[i, :, :c].set(wi)
        b1 = b1.at[i, :, :c].set(0.0)

    params = dict(w0=w0, b0=b0, gamma=gamma, beta=beta,
                  running_mean=running_mean, running_var=running_var,
                  w1=w1, b1=b1)
    return params, class_counts


def reference_forward(x, params, class_counts):
    """Pure-JAX reference mirroring the PyTorch per-head forward (eval BN)."""
    embs, probs = [], []
    for h, c in enumerate(class_counts):
        proj = x @ params["w0"][h] + params["b0"][h]
        inv = jax.lax.rsqrt(params["running_var"][h] + _BN_EPS)
        emb = (proj - params["running_mean"][h]) * inv * params["gamma"][h] \
            + params["beta"][h]
        embs.append(emb)
        act = 0.5 * emb * (1.0 + jax.scipy.special.erf(emb * _INV_SQRT_2))
        logit = act @ params["w1"][h][:, :c] + params["b1"][h][:, :c]
        probs.append(jax.nn.log_softmax(logit, axis=-1))
    return jnp.concatenate(embs, axis=1), probs


if __name__ == "__main__":
    # TODO(synk): autograd semantics of .detach().clone() are not modeled
    # (inference-only kernel); BatchNorm1d train-mode batch statistics are not
    # implemented (eval-mode running stats are used).
    dict_attribute = {
        "color": ["red", "green", "blue", "black"],     # 4 values -> 5 classes
        "shape": ["circle", "square", "triangle"],      # 3 values -> 4 classes
        "size": ["s", "m", "l", "xl", "xxl"],           # 5 values -> 6 classes
    }
    in_dim, projected_dim, batch = 32, 16, 8

    key = jax.random.PRNGKey(0)
    key_params, key_x = jax.random.split(key)
    params, class_counts = init_params(key_params, dict_attribute, in_dim, projected_dim)
    x = jax.random.normal(key_x, (batch, in_dim), jnp.float32)

    fused = fuse_params(params, class_counts)                       # one-time prep
    attribute_embedding, probability = attribute_classifier5_forward(
        x, fused, class_counts)
    jax.block_until_ready(attribute_embedding)
    jax.block_until_ready(probability)

    # shape checks
    H = len(dict_attribute)
    assert attribute_embedding.shape == (batch, H * projected_dim)
    for p, c in zip(probability, class_counts):
        assert p.shape == (batch, c)

    # numerical check against a pure-JAX per-head reference
    emb_ref, probs_ref = reference_forward(x, params, class_counts)
    assert jnp.allclose(attribute_embedding, emb_ref, atol=1e-4, rtol=1e-4)
    for p, pr in zip(probability, probs_ref):
        assert jnp.allclose(p, pr, atol=1e-4, rtol=1e-4)

    print("KERNEL_OK")
</pallas_src>

<mosaic_0001>
module attributes {stable_mosaic.version = 11 : i64} {
  func.func @fused_attribute_kernel(%arg0: i32, %arg1: memref<8x32xf32, #tpu.memory_space<vmem>>, %arg2: memref<32x48xf32, #tpu.memory_space<vmem>>, %arg3: memref<1x48xf32, #tpu.memory_space<vmem>>, %arg4: memref<48x18xf32, #tpu.memory_space<vmem>>, %arg5: memref<1x18xf32, #tpu.memory_space<vmem>>, %arg6: memref<8x48xf32, #tpu.memory_space<vmem>>, %arg7: memref<8x18xf32, #tpu.memory_space<vmem>>) attributes {dimension_semantics = [#tpu.dimension_semantics<parallel>], iteration_bounds = array<i64: 1>, scalar_prefetch = 0 : i64, scratch_operands = 0 : i64, tpu.core_type = #tpu.core_type<tc>, window_params = [{transform_indices = @transform_0, window_bounds = array<i64: 8, 32>}, {pipeline_mode = #tpu.pipeline_mode<synchronous>, transform_indices = @transform_1, window_bounds = array<i64: 32, 48>}, {pipeline_mode = #tpu.pipeline_mode<synchronous>, transform_indices = @transform_2, window_bounds = array<i64: 1, 48>}, {pipeline_mode = #tpu.pipeline_mode<synchronous>, transform_indices = @transform_3, window_bounds = array<i64: 48, 18>}, {pipeline_mode = #tpu.pipeline_mode<synchronous>, transform_indices = @transform_4, window_bounds = array<i64: 1, 18>}, {transform_indices = @transform_5, window_bounds = array<i64: 8, 48>}, {transform_indices = @transform_6, window_bounds = array<i64: 8, 18>}]} {
    %c0 = arith.constant 0 : index
    %c0_0 = arith.constant 0 : index
    %0 = vector.load %arg1[%c0, %c0_0] : memref<8x32xf32, #tpu.memory_space<vmem>>, vector<8x32xf32>
    %c0_1 = arith.constant 0 : index
    %c0_2 = arith.constant 0 : index
    %1 = vector.load %arg2[%c0_1, %c0_2] : memref<32x48xf32, #tpu.memory_space<vmem>>, vector<32x48xf32>
    %cst = arith.constant dense<0.000000e+00> : vector<8x48xf32>
    %2 = tpu.matmul %0, %1, %cst {dimension_numbers = #tpu.dot_dimension_numbers<[1], [0], [0], [1], [0, 0, 1, 1], [], []>} : vector<8x32xf32>, vector<32x48xf32>, vector<8x48xf32> -> vector<8x48xf32>
    %c0_3 = arith.constant 0 : index
    %c0_4 = arith.constant 0 : index
    %3 = vector.load %arg3[%c0_3, %c0_4] : memref<1x48xf32, #tpu.memory_space<vmem>>, vector<1x48xf32>
    %4 = vector.broadcast %3 : vector<1x48xf32> to vector<8x48xf32>
    %5 = arith.addf %2, %4 : vector<8x48xf32>
    %c0_5 = arith.constant 0 : index
    %c0_6 = arith.constant 0 : index
    %6 = vector.load %arg6[%c0_5, %c0_6] : memref<8x48xf32, #tpu.memory_space<vmem>>, vector<8x48xf32>
    tpu.vector_store %arg6[%c0_5, %c0_6], %5 {strides = array<i32>} : memref<8x48xf32, #tpu.memory_space<vmem>>, vector<8x48xf32>,
    %cst_7 = arith.constant 5.000000e-01 : f32
    %7 = vector.broadcast %cst_7 : f32 to vector<8x48xf32>
    %8 = arith.mulf %7, %5 : vector<8x48xf32>
    %cst_8 = arith.constant 0.707106769 : f32
    %9 = vector.broadcast %cst_8 : f32 to vector<8x48xf32>
    %10 = arith.mulf %5, %9 : vector<8x48xf32>
    %11 = math.absf %10 : vector<8x48xf32>
    %cst_9 = arith.constant 0.327591091 : f32
    %12 = vector.broadcast %cst_9 : f32 to vector<8x48xf32>
    %13 = arith.mulf %12, %11 : vector<8x48xf32>
    %cst_10 = arith.constant 1.000000e+00 : f32
    %14 = vector.broadcast %cst_10 : f32 to vector<8x48xf32>
    %15 = arith.addf %14, %13 : vector<8x48xf32>
    %cst_11 = arith.constant 1.000000e+00 : f32
    %16 = vector.broadcast %cst_11 : f32 to vector<8x48xf32>
    %17 = arith.divf %16, %15 : vector<8x48xf32>
    %cst_12 = arith.constant 1.06140542 : f32
    %18 = vector.broadcast %cst_12 : f32 to vector<8x48xf32>
    %19 = arith.mulf %18, %17 : vector<8x48xf32>
    %cst_13 = arith.constant -1.45315206 : f32
    %20 = vector.broadcast %cst_13 : f32 to vector<8x48xf32>
    %21 = arith.addf %19, %20 : vector<8x48xf32>
    %22 = arith.mulf %21, %17 : vector<8x48xf32>
    %cst_14 = arith.constant 1.42141378 : f32
    %23 = vector.broadcast %cst_14 : f32 to vector<8x48xf32>
    %24 = arith.addf %22, %23 : vector<8x48xf32>
    %25 = arith.mulf %24, %17 : vector<8x48xf32>
    %cst_15 = arith.constant -0.284496725 : f32
    %26 = vector.broadcast %cst_15 : f32 to vector<8x48xf32>
    %27 = arith.addf %25, %26 : vector<8x48xf32>
    %28 = arith.mulf %27, %17 : vector<8x48xf32>
    %cst_16 = arith.constant 0.254829586 : f32
    %29 = vector.broadcast %cst_16 : f32 to vector<8x48xf32>
    %30 = arith.addf %28, %29 : vector<8x48xf32>
    %31 = arith.mulf %30, %17 : vector<8x48xf32>
    %cst_17 = arith.constant 0.000000e+00 : f32
    %32 = vector.broadcast %cst_17 : f32 to vector<8x48xf32>
    %33 = arith.subf %32, %11 : vector<8x48xf32>
    %34 = arith.mulf %33, %11 : vector<8x48xf32>
    %35 = math.exp %34 : vector<8x48xf32>
    %36 = arith.mulf %31, %35 : vector<8x48xf32>
    %cst_18 = arith.constant 1.000000e+00 : f32
    %37 = vector.broadcast %cst_18 : f32 to vector<8x48xf32>
    %38 = arith.subf %37, %36 : vector<8x48xf32>
    %cst_19 = arith.constant 0.000000e+00 : f32
    %39 = vector.broadcast %cst_19 : f32 to vector<8x48xf32>
    %40 = arith.cmpf oge, %10, %39 : vector<8x48xf32>
    %cst_20 = arith.constant 0.000000e+00 : f32
    %41 = vector.broadcast %cst_20 : f32 to vector<8x48xf32>
    %42 = arith.subf %41, %38 : vector<8x48xf32>
    %43 = arith.select %40, %38, %42 : vector<8x48xi1>, vector<8x48xf32>
    %cst_21 = arith.constant 1.000000e+00 : f32
    %44 = vector.broadcast %cst_21 : f32 to vector<8x48xf32>
    %45 = arith.addf %44, %43 : vector<8x48xf32>
    %46 = arith.mulf %8, %45 : vector<8x48xf32>
    %c0_22 = arith.constant 0 : index
    %c0_23 = arith.constant 0 : index
    %47 = vector.load %arg4[%c0_22, %c0_23] : memref<48x18xf32, #tpu.memory_space<vmem>>, vector<48x18xf32>
    %cst_24 = arith.constant dense<0.000000e+00> : vector<8x18xf32>
    %48 = tpu.matmul %46, %47, %cst_24 {dimension_numbers = #tpu.dot_dimension_numbers<[1], [0], [0], [1], [0, 0, 1, 1], [], []>} : vector<8x48xf32>, vector<48x18xf32>, vector<8x18xf32> -> vector<8x18xf32>
    %c0_25 = arith.constant 0 : index
    %c0_26 = arith.constant 0 : index
    %49 = vector.load %arg5[%c0_25, %c0_26] : memref<1x18xf32, #tpu.memory_space<vmem>>, vector<1x18xf32>
    %50 = vector.broadcast %49 : vector<1x18xf32> to vector<8x18xf32>
    %51 = arith.addf %48, %50 : vector<8x18xf32>
    %52 = vector.extract_strided_slice %51 {offsets = [0, 0], sizes = [8, 6], strides = [1, 1]} : vector<8x18xf32> to vector<8x6xf32>
    %cst_27 = arith.constant dense<0xFF800000> : vector<8xf32>
    %53 = vector.multi_reduction <maximumf>, %52, %cst_27 [1] : vector<8x6xf32> to vector<8xf32>
    %54 = vector.shape_cast %53 : vector<8xf32> to vector<8x1xf32>
    %55 = vector.broadcast %54 : vector<8x1xf32> to vector<8x6xf32>
    %56 = arith.subf %52, %55 : vector<8x6xf32>
    %57 = math.exp %56 : vector<8x6xf32>
    %cst_28 = arith.constant dense<0.000000e+00> : vector<8xf32>
    %58 = vector.multi_reduction <add>, %57, %cst_28 [1] : vector<8x6xf32> to vector<8xf32>
    %59 = vector.shape_cast %58 : vector<8xf32> to vector<8x1xf32>
    %60 = math.log %59 : vector<8x1xf32>
    %61 = vector.broadcast %60 : vector<8x1xf32> to vector<8x6xf32>
    %62 = arith.subf %56, %61 : vector<8x6xf32>
    %c0_29 = arith.constant 0 : index
    %c0_30 = arith.constant 0 : index
    %63 = vector.load %arg7[%c0_29, %c0_30] : memref<8x18xf32, #tpu.memory_space<vmem>>, vector<8x6xf32>
    tpu.vector_store %arg7[%c0_29, %c0_30], %62 {strides = array<i32>} : memref<8x18xf32, #tpu.memory_space<vmem>>, vector<8x6xf32>,
    %64 = vector.extract_strided_slice %51 {offsets = [0, 6], sizes = [8, 6], strides = [1, 1]} : vector<8x18xf32> to vector<8x6xf32>
    %cst_31 = arith.constant dense<0xFF800000> : vector<8xf32>
    %65 = vector.multi_reduction <maximumf>, %64, %cst_31 [1] : vector<8x6xf32> to vector<8xf32>
    %66 = vector.shape_cast %65 : vector<8xf32> to vector<8x1xf32>
    %67 = vector.broadcast %66 : vector<8x1xf32> to vector<8x6xf32>
    %68 = arith.subf %64, %67 : vector<8x6xf32>
    %69 = math.exp %68 : vector<8x6xf32>
    %cst_32 = arith.constant dense<0.000000e+00> : vector<8xf32>
    %70 = vector.multi_reduction <add>, %69, %cst_32 [1] : vector<8x6xf32> to vector<8xf32>
    %71 = vector.shape_cast %70 : vector<8xf32> to vector<8x1xf32>
    %72 = math.log %71 : vector<8x1xf32>
    %73 = vector.broadcast %72 : vector<8x1xf32> to vector<8x6xf32>
    %74 = arith.subf %68, %73 : vector<8x6xf32>
    %c0_33 = arith.constant 0 : index
    %c6 = arith.constant 6 : index
    %75 = vector.load %arg7[%c0_33, %c6] : memref<8x18xf32, #tpu.memory_space<vmem>>, vector<8x6xf32>
    tpu.vector_store %arg7[%c0_33, %c6], %74 {strides = array<i32>} : memref<8x18xf32, #tpu.memory_space<vmem>>, vector<8x6xf32>,
    %76 = vector.extract_strided_slice %51 {offsets = [0, 12], sizes = [8, 6], strides = [1, 1]} : vector<8x18xf32> to vector<8x6xf32>
    %cst_34 = arith.constant dense<0xFF800000> : vector<8xf32>
    %77 = vector.multi_reduction <maximumf>, %76, %cst_34 [1] : vector<8x6xf32> to vector<8xf32>
    %78 = vector.shape_cast %77 : vector<8xf32> to vector<8x1xf32>
    %79 = vector.broadcast %78 : vector<8x1xf32> to vector<8x6xf32>
    %80 = arith.subf %76, %79 : vector<8x6xf32>
    %81 = math.exp %80 : vector<8x6xf32>
    %cst_35 = arith.constant dense<0.000000e+00> : vector<8xf32>
    %82 = vector.multi_reduction <add>, %81, %cst_35 [1] : vector<8x6xf32> to vector<8xf32>
    %83 = vector.shape_cast %82 : vector<8xf32> to vector<8x1xf32>
    %84 = math.log %83 : vector<8x1xf32>
    %85 = vector.broadcast %84 : vector<8x1xf32> to vector<8x6xf32>
    %86 = arith.subf %80, %85 : vector<8x6xf32>
    %c0_36 = arith.constant 0 : index
    %c12 = arith.constant 12 : index
    %87 = vector.load %arg7[%c0_36, %c12] : memref<8x18xf32, #tpu.memory_space<vmem>>, vector<8x6xf32>
    tpu.vector_store %arg7[%c0_36, %c12], %86 {strides = array<i32>} : memref<8x18xf32, #tpu.memory_space<vmem>>, vector<8x6xf32>,
    return
  }
  func.func @transform_0(%arg0: i32) -> (i32, i32) {
    %c0_i32 = arith.constant 0 : i32
    %c0_i32_0 = arith.constant 0 : i32
    return %arg0, %c0_i32 : i32, i32
  }
  func.func @transform_1(%arg0: i32) -> (i32, i32) {
    %c0_i32 = arith.constant 0 : i32
    %c0_i32_0 = arith.constant 0 : i32
    %c0_i32_1 = arith.constant 0 : i32
    return %c0_i32, %c0_i32_0 : i32, i32
  }
  func.func @transform_2(%arg0: i32) -> (i32, i32) {
    %c0_i32 = arith.constant 0 : i32
    %c0_i32_0 = arith.constant 0 : i32
    %c0_i32_1 = arith.constant 0 : i32
    return %c0_i32, %c0_i32_0 : i32, i32
  }
  func.func @transform_3(%arg0: i32) -> (i32, i32) {
    %c0_i32 = arith.constant 0 : i32
    %c0_i32_0 = arith.constant 0 : i32
    %c0_i32_1 = arith.constant 0 : i32
    return %c0_i32, %c0_i32_0 : i32, i32
  }
  func.func @transform_4(%arg0: i32) -> (i32, i32) {
    %c0_i32 = arith.constant 0 : i32
    %c0_i32_0 = arith.constant 0 : i32
    %c0_i32_1 = arith.constant 0 : i32
    return %c0_i32, %c0_i32_0 : i32, i32
  }
  func.func @transform_5(%arg0: i32) -> (i32, i32) {
    %c0_i32 = arith.constant 0 : i32
    %c0_i32_0 = arith.constant 0 : i32
    return %arg0, %c0_i32 : i32, i32
  }
  func.func @transform_6(%arg0: i32) -> (i32, i32) {
    %c0_i32 = arith.constant 0 : i32
    %c0_i32_0 = arith.constant 0 : i32
    return %arg0, %c0_i32 : i32, i32
  }
}

</mosaic_0001>

<bundles_post_ra>
// kernel: tpu_custom_call.1
= control target key start
LH: loop header
LB: loop body
LE: loop exit
PB: predicated region body
PF: predicated region fallthrough
CT: control target
= control target key end

     0   :  { %12 = vsyncpa [#allocation3], 0  ;;  %s385_s0 = inlined_call_operand.vmem [shape: f32[8,32], index: 0, kind: input, shape index: {}]   ;;  %s386_s1 = inlined_call_operand.vmem [shape: f32[32,48], index: 1, kind: input, shape index: {}]   ;;  %s387_s2 = inlined_call_operand.vmem [shape: f32[1,48], index: 2, kind: input, shape index: {}]   ;;  %s388_s3 = inlined_call_operand.vmem [shape: f32[48,18], index: 3, kind: input, shape index: {}]   ;;  %s389_s4 = inlined_call_operand.vmem [shape: f32[1,18], index: 4, kind: input, shape index: {}]   ;;  %s390_s5 = inlined_call_operand.hbm [shape: f32[8,48], index: 5, kind: output, shape index: {0}]   ;;  %s391_s6 = inlined_call_operand.hbm [shape: f32[8,18], index: 6, kind: output, shape index: {1}]  }
   0x1   :  { %v28_v0 = vld [vmem:[%s386_s1 + $0x18] sm:$0xff]  ;;  %v27_v1 = vld [vmem:[%s386_s1 + $0x10] sm:$0xff]  ;;  %v26_v2 = vld [vmem:[%s386_s1 + $0x8] sm:$0xff] }
   0x2   :  { %49 = vmatpush.msra.mxu0 %v28_v0 }
   0x3   :  { %13 = vsyncpa [#allocation5], 0  ;;  %v25_v3 = vld [vmem:[%s386_s1] sm:$0xff]  ;;  %vm33_vm0 = vcmask 261120   ;;  %v104_v5 = vld [vmem:[%s388_s3 + $0x28] sm:$0xff]  ;;  %vm57_vm1 = vcmask 392192  }
   0x4   :  { %50 = vmatpush.msra.mxu0 %v27_v1  ;;  %v24_v4 = vld [vmem:[%s385_s0] sm:$0xff]  ;;  %122 = vmatpush.msra.mxu1 %v104_v5  ;;  %v102_v7 = vld [vmem:[%s388_s3 + $0x18] sm:$0xff]  ;;  %v101_v8 = vld [vmem:[%s388_s3 + $0x10] sm:$0xff]  ;;  %vm146_vm7 = vcmask 97328   ;;  %vm132_vm8 = vcmask 48128   ;;  %vm164_vm9 = vcmask 146528  }
   0x5   :  { %v103_v6 = vld [vmem:[%s388_s3 + $0x20] sm:$0xff]  ;;  %v100_v9 = vld [vmem:[%s388_s3 + $0x8] sm:$0xff]  ;;  %s291_s19 = smov 116   ;;  %s292_s20 = smov [#allocation2]  }
   0x6   :  { %51 = vmatpush.msra.mxu0 %v26_v2  ;;  %123 = vmatpush.msra.mxu1 %v103_v6  ;;  %v220_v10 = vld [vmem:[%s387_s2] ss:$0 sm:$0xff]  ;;  %s187_s21 = sshll.u32 %s292_s20, 4  ;;  %s189_s24 = sshll.u32 %s390_s5, 4  ;;  %s188_s21 = int_to_ptr.vmem [resolvable:$true] %s187_s21  ;;  %s190_s24 = int_to_ptr.hbm [resolvable:$true] %s189_s24 }
   0x7   :  { %v99_v11 = vld [vmem:[%s388_s3] sm:$0xff]  ;;  %s293_s5 = smov [#allocation4]   ;;  %s200_s28 = sshll.u32 %s391_s6, 4  ;;  %s201_s28 = int_to_ptr.hbm [resolvable:$true] %s200_s28 }
   0x8   :  { %52 = vmatpush.msra.mxu0 %v25_v3  ;;  %124 = vmatpush.msra.mxu1 %v102_v7  ;;  %v221_v48 = vld [vmem:[%s389_s4] ss:$0 sm:$0xff]  ;;  %s290_s4 = smov 122   ;;  %s198_s25 = sshll.u32 %s293_s5, 4  ;;  %s199_s25 = int_to_ptr.vmem [resolvable:$true] %s198_s25 }
   0x9   :  { %214 = vmatmul.msk.f32.vlgmr.msra.gmra.mxu0 %vm33_vm0, %v24_v4 }
   0xa   :  { %125 = vmatpush.msra.mxu1 %v101_v8 }
   0xc   :  { %126 = vmatpush.msra.mxu1 %v100_v9 }
   0xe   :  { %127 = vmatpush.msra.mxu1 %v99_v11 }
  0x86   :  { %v54_v12 = vpop.f32.mrf.mxu0 }
  0x87   :  { %v55_v13 = vadd.f32 %v220_v10, %v54_v12 }
  0x89   :  { %v60_v14 = vmul.f32 0.70710677, %v55_v13  ;;  %58 = vst.msk [vmem:[#allocation2] sm:$0xff] %vm57_vm1, %v55_v13  ;;  %v59_v45 = vmul.f32 0.5, %v55_v13 }
  0x8a   :  { %192 = dma.vmem_to_hbm [thread:$0]  %s188_s21, 128, %s190_s24, [#allocation3]  }
  0x8b   :  { %v61_v15 = vand.u32 2147483647, %v60_v14  ;;  %vm94_vm6 = vcmp.ge.f32.partialorder %v60_v14, 0.0 }
  0x8d   :  { %v62_v16 = vmul.f32 0.3275911, %v61_v15  ;;  %v88_v27 = vsub.f32 0.0, %v61_v15 }
  0x8f   :  { %v63_v17 = vadd.f32 1.0, %v62_v16  ;;  %v89_v31 = vmul.f32 %v88_v27, %v61_v15 }
  0x91   :  { %222 = vrcp.f32 %v63_v17  ;;  %v75_v21 = vand.u32 2147483648, %v63_v17  ;;  %v73_v23 = vand.u32 2147483647, %v63_v17  ;;  %vm69_vm3 = vweird.f32 %v63_v17 }
  0x92   :  { %v90_v34 = vmul.f32 1.442695, %v89_v31 }
  0x93   :  { %v76_v25 = vor.u32 1.1754944e-38, %v75_v21  ;;  %vm74_vm5 = vcmp.eq.f32.partialorder %v73_v23, 8.507059e+37 }
  0x94   :  { %224 = vpow2.f32 %v90_v34 }
  0x97   :  { %v223_v18 = vpop.eup %222 }
  0x98   :  { %v65_v19 = vmul.f32 %v223_v18, %v63_v17  ;;  %vm70_vm2 = vweird.f32 %v223_v18 }
  0x99   :  { %vm71_vm4 = vmor %vm69_vm3, %vm70_vm2 }
  0x9a   :  { %v66_v20 = vsub.f32 1.0, %v65_v19  ;;  %v225_v40 = vpop.eup %224 }
  0x9c   :  { %v67_v22 = vmul.f32 %v223_v18, %v66_v20 }
  0x9e   :  { %v68_v24 = vadd.f32 %v223_v18, %v67_v22 }
  0xa0   :  { %v72_v26 = vsel %vm71_vm4, %v223_v18, %v68_v24 }
  0xa1   :  { %v77_v28 = vsel %vm74_vm5, %v76_v25, %v72_v26 }
  0xa2   :  { %v79_v29 = vmul.f32 1.0614054, %v77_v28 }
  0xa4   :  { %v80_v30 = vadd.f32 -1.4531521, %v79_v29 }
  0xa6   :  { %v81_v32 = vmul.f32 %v80_v30, %v77_v28 }
  0xa8   :  { %v82_v33 = vadd.f32 1.4214138, %v81_v32 }
  0xaa   :  { %v83_v35 = vmul.f32 %v82_v33, %v77_v28 }
  0xac   :  { %v84_v36 = vadd.f32 -0.28449672, %v83_v35 }
  0xae   :  { %v85_v37 = vmul.f32 %v84_v36, %v77_v28 }
  0xb0   :  { %v86_v38 = vadd.f32 0.2548296, %v85_v37 }
  0xb2   :  { %v87_v39 = vmul.f32 %v86_v38, %v77_v28 }
  0xb4   :  { %v92_v41 = vmul.f32 %v225_v40, %v87_v39 }
  0xb6   :  { %v93_v42 = vsub.f32 1.0, %v92_v41 }
  0xb8   :  { %v95_v43 = vsub.f32 0.0, %v93_v42 }
  0xba   :  { %v96_v44 = vsel %vm94_vm6, %v93_v42, %v95_v43 }
  0xbb   :  { %v97_v46 = vadd.f32 1.0, %v96_v44 }
  0xbd   :  { %v98_v47 = vmul.f32 %v97_v46, %v59_v45 }
  0xbf   :  { %215 = vmatmul.msk.f32.vlgmr.msra.gmra.mxu1 %vm57_vm1, %v98_v47 }
 0x13c   :  { %v129_v49 = vpop.f32.mrf.mxu1 }
 0x13d   :  { %v130_v50 = vadd.f32 %v221_v48, %v129_v49 }
 0x13f   :  { %v147_v51 = vsel %vm146_vm7, %v130_v50, -inf  ;;  %v133_v52 = vsel %vm132_vm8, %v130_v50, -inf  ;;  %v165_v53 = vsel %vm164_vm9, %v130_v50, -inf }
 0x140   :  { %148 = vmax.xlane.f32.xlu0 %v147_v51  ;;  %134 = vmax.xlane.f32.xlu1 %v133_v52 }
 0x148   :  { %166 = vmax.xlane.f32.xlu0 %v165_v53 }
 0x1b3   :  { %v149_v54 = vpop.xlane.xlu0 %148  ;;  %v135_v62 = vpop.xlane.xlu1 %134 }
 0x1b4   :  { %v150_v55 = vsub.f32 %v130_v50, %v149_v54  ;;  %v136_v63 = vsub.f32 %v130_v50, %v135_v62 }
 0x1b6   :  { %v151_v56 = vmul.f32 1.442695, %v150_v55  ;;  %v137_v0 = vmul.f32 1.442695, %v136_v63 }
 0x1b8   :  { %226 = vpow2.f32 %v151_v56 }
 0x1bb   :  { %v167_v57 = vpop.xlane.xlu0 %166 }
 0x1bc   :  { %v168_v58 = vsub.f32 %v130_v50, %v167_v57 }
 0x1be   :  { %v227_v59 = vpop.eup %226  ;;  %v169_v60 = vmul.f32 1.442695, %v168_v58 }
 0x1bf   :  { %154 = vrot.lane.b32.xlu1 %v227_v59, %s290_s4 }
 0x1c0   :  { %228 = vpow2.f32 %v169_v60 }
 0x1c1   :  { %230 = vpow2.f32 %v137_v0 }
 0x1c6   :  { %v229_v61 = vpop.eup %228 }
 0x1c7   :  { %172 = vrot.lane.b32.xlu2 %v229_v61, %s291_s19  ;;  %v231_v1 = vpop.eup %230 }
 0x1c8   :  { %v139_v2 = vsel %vm132_vm8, %v231_v1, 0.0 }
 0x1f0   :  { %140 = vadd.xlane.f32.xlu2 %v139_v2 }
 0x221   :  { %v173_v5 = vpop.permute.xlu2 %172 }
 0x222   :  { %v175_v6 = vsel %vm132_vm8, %v173_v5, 0.0 }
 0x231   :  { %v155_v3 = vpop.permute.xlu1 %154 }
 0x232   :  { %v157_v4 = vsel %vm132_vm8, %v155_v3, 0.0 }
 0x233   :  { %158 = vadd.xlane.f32.xlu0 %v157_v4 }
 0x23b   :  { %176 = vadd.xlane.f32.xlu0 %v175_v6 }
 0x263   :  { %v141_v7 = vpop.xlane.xlu2 %140 }
 0x264   :  { %232 = vlog2.f32 %v141_v7 }
 0x26a   :  { %v233_v8 = vpop.eup %232 }
 0x26b   :  { %v143_v9 = vmul.f32 0.6931472, %v233_v8 }
 0x26d   :  { %v144_v10 = vsub.f32 %v136_v63, %v143_v9 }
 0x26f   :  { %145 = vst.msk [vmem:[#allocation4] sm:$0xff] %vm132_vm8, %v144_v10 }
 0x2a6   :  { %v159_v11 = vpop.xlane.xlu0 %158 }
 0x2a7   :  { %234 = vlog2.f32 %v159_v11 }
 0x2ad   :  { %v235_v12 = vpop.eup %234 }
 0x2ae   :  { %v161_v13 = vmul.f32 0.6931472, %v235_v12  ;;  %v177_v14 = vpop.xlane.xlu0 %176 }
 0x2af   :  { %236 = vlog2.f32 %v177_v14 }
 0x2b0   :  { %v162_v15 = vsub.f32 %v150_v55, %v161_v13 }
 0x2b2   :  { %163 = vst.msk [vmem:[#allocation4] sm:$0xff] %vm146_vm7, %v162_v15 }
 0x2b5   :  { %v237_v16 = vpop.eup %236 }
 0x2b6   :  { %v179_v17 = vmul.f32 0.6931472, %v237_v16 }
 0x2b8   :  { %v180_v18 = vsub.f32 %v168_v58, %v179_v17 }
 0x2ba   :  { %181 = vst.msk [vmem:[#allocation4] sm:$0xff] %vm164_vm9, %v180_v18 }
 0x2bb   :  { %203 = dma.vmem_to_hbm [thread:$0]  %s199_s25, 128, %s201_s28, [#allocation5]  }
 0x2bc   :  { %286 = dma.done.wait [#allocation3], 128  }
 0x2bd   :  { %287 = vsyncadd [#allocation3], 4294967168 }
 0x2be   :  { %288 = dma.done.wait [#allocation5], 128  }
 0x2bf   :  { %289 = vsyncadd [#allocation5], 4294967168 }
 0x2c0   :  { %212 = vsyncpa [#allocation3], 1 }
 0x2c1   :  { %213 = vsyncpa [#allocation5], 1 }

</bundles_post_ra>
